<compile_context>
chip_gen: v5e
topology: v5e:2x2
jax: 0.10.0
libtpu: 0.0.40
codegen_flags: <defaults>
</compile_context>

<pallas_src>
import jax
import jax.numpy as jnp
from jax.experimental import pallas as pl
from jax.experimental.pallas import tpu as pltpu


# ----------------------------- helpers --------------------------------------


def _round_up(x, m):
    return ((x + m - 1) // m) * m


def _default_num_cores():
    """Best-effort TensorCore count of the local device (1 on v5e/v6e,
    2 on megacore/v7x-style parts).  Used only to pick the grid length."""
    try:
        d = jax.devices()[0]
        if d.platform != "tpu":
            return 1
        kind = getattr(d, "device_kind", "").lower()
        if ("v4" in kind) or ("v5p" in kind) or ("v7" in kind):
            return 2
    except Exception:
        pass
    return 1


def _activation(name, h):
    if name == "tanh":
        return jnp.tanh(h)
    if name == "relu":
        return jnp.maximum(h, 0.0)
    if name == "sigmoid":
        return jax.nn.sigmoid(h)
    if name == "elu":
        # Clamp the discarded branch so exp() never sees large positive h.
        return jnp.where(h > 0, h, jnp.expm1(jnp.minimum(h, 0.0)))
    if name == "leaky_relu":
        return jnp.where(h > 0, h, 0.01 * h)
    return h  # activation=None on the last layer


def _dot(w, h, precision):
    if precision is None:
        return jnp.dot(w, h, preferred_element_type=jnp.float32)
    return jnp.dot(w, h, preferred_element_type=jnp.float32, precision=precision)


# ------------------------------ kernel --------------------------------------


def _make_kernel(num_layers, activation, out_dim, in_dim, layer0_on_vpu, precision):
    def layer0(X, W0, b0):
        # X: (in_dim, tm), W0: (P, in_dim) with normalization folded in, b0: (P, 1)
        if layer0_on_vpu:
            # K is tiny (e.g. 3): broadcast FMAs on the VPU instead of a
            # heavily padded MXU pass.
            H = W0[:, 0:1] * X[0:1, :] + b0
            for k in range(1, in_dim):
                H = H + W0[:, k : k + 1] * X[k : k + 1, :]
            return H
        return _dot(W0, X, precision) + b0

    if num_layers == 1:
        def kernel(xT_ref, w0_ref, b0_ref, out_ref):
            H = layer0(xT_ref[...], w0_ref[...], b0_ref[...])
            out_ref[...] = H[:out_dim, :].astype(out_ref.dtype)

        return kernel

    def kernel(xT_ref, w0_ref, b0_ref, wslab_ref, bslab_ref, out_ref):
        H = _activation(activation, layer0(xT_ref[...], w0_ref[...], b0_ref[...]))
        for i in range(num_layers - 1):
            # Zero-padded (P, P) weight / (P, 1) bias, MXU pass with N = tm.
            H = _dot(wslab_ref[i], H, precision) + bslab_ref[i]
            if i < num_layers - 2:
                H = _activation(activation, H)
        out_ref[...] = H[:out_dim, :].astype(out_ref.dtype)

    return kernel


# ------------------------------ wrapper --------------------------------------


def neural_net_forward(x, lb, ub, weights, biases, activation="tanh",
                       tm=None, num_cores=None, precision=None):
    """Pallas forward pass of NeuralNet.

    x:       (N, in_dim) float32
    lb, ub:  (in_dim,)    float32   (must satisfy ub > lb; validate at setup)
    weights: list of (out_i, in_i) float32   (PyTorch nn.Linear layout)
    biases:  list of (out_i,)      float32
    precision: None (JAX default) or jax.lax.Precision.* for the MXU dots.
    """
    N, in_dim = x.shape
    num_layers = len(weights)
    out_dim = weights[-1].shape[0]
    f32 = jnp.float32

    # ---- overhead-aware batch tiling -----------------------------------
    if num_cores is None:
        num_cores = _default_num_cores()
    if tm is None:
        per_core = pl.cdiv(N, num_cores)
        tm = max(128, min(_round_up(per_core, 128), 1024))
    n_tiles = _round_up(pl.cdiv(N, tm), num_cores)  # even share per TensorCore
    n_pad = n_tiles * tm

    # ---- fold normalization 2*(x-lb)/(ub-lb)-1 into layer 0 -------------
    lbf = lb.astype(f32)
    ubf = ub.astype(f32)
    inv = 1.0 / (ubf - lbf)
    scale = 2.0 * inv                        # (in_dim,)
    shift = -(2.0 * lbf * inv + 1.0)         # (in_dim,)

    # Common padded feature width (zero padding is numerically benign).
    P = _round_up(max(w.shape[0] for w in weights), 8)

    w0 = weights[0].astype(f32) * scale[None, :]                       # (out0, in_dim)
    b0 = jnp.sum(weights[0].astype(f32) * shift[None, :], axis=1) \
        + biases[0].astype(f32)                                        # (out0,)
    out0 = weights[0].shape[0]
    w0p = jnp.zeros((P, in_dim), f32).at[:out0, :].set(w0)
    b0p = jnp.zeros((P, 1), f32).at[:out0, 0].set(b0)

    # ---- pack layers 1..L-1 into one weight slab + one bias slab --------
    args = []
    in_specs = []
    if num_layers > 1:
        w_list, b_list = [], []
        for w, b in zip(weights[1:], biases[1:]):
            o, i_ = w.shape
            w_list.append(jnp.zeros((P, P), f32).at[:o, :i_].set(w.astype(f32)))
            b_list.append(jnp.zeros((P, 1), f32).at[:o, 0].set(b.astype(f32)))
        wslab = jnp.stack(w_list)            # (L-1, P, P)
        bslab = jnp.stack(b_list)            # (L-1, P, 1)
        args = [wslab, bslab]
        in_specs = [
            pl.BlockSpec(wslab.shape, lambda i: (0, 0, 0)),   # whole slab, resident
            pl.BlockSpec(bslab.shape, lambda i: (0, 0, 0)),
        ]

    # ---- batch on lanes: transpose + pad (fuses under jit) --------------
    xT = x.astype(f32).T
    if n_pad != N:
        xT = jnp.pad(xT, ((0, 0), (0, n_pad - N)))

    in_specs = [
        pl.BlockSpec((in_dim, tm), lambda i: (0, i)),          # x tiled over lanes
        pl.BlockSpec((P, in_dim), lambda i: (0, 0)),           # folded W0 (resident)
        pl.BlockSpec((P, 1), lambda i: (0, 0)),                # folded b0 (resident)
    ] + in_specs
    args = [xT, w0p, b0p] + args

    out_spec = pl.BlockSpec((out_dim, tm), lambda i: (0, i))   # lane-dense store

    kernel = _make_kernel(num_layers, activation, out_dim, in_dim,
                          layer0_on_vpu=(in_dim <= 8), precision=precision)

    fn = pl.pallas_call(
        kernel,
        out_shape=jax.ShapeDtypeStruct((out_dim, n_pad), jnp.float32),
        grid_spec=pltpu.PrefetchScalarGridSpec(
            num_scalar_prefetch=0,
            grid=(n_tiles,),
            in_specs=in_specs,
            out_specs=out_spec,
        ),
        compiler_params=pltpu.CompilerParams(
            dimension_semantics=("parallel",)),
    )
    outT = fn(*args)                      # (out_dim, n_pad)
    return outT[:, :N].T                  # (N, out_dim)


# --------------------------- reference & init --------------------------------


def neural_net_reference(x, lb, ub, weights, biases, activation="tanh"):
    H = 2.0 * (x - lb[None, :]) / (ub[None, :] - lb[None, :]) - 1.0
    n = len(weights)
    for i, (w, b) in enumerate(zip(weights, biases)):
        H = jnp.dot(H, w.T) + b[None, :]      # weights are (out, in)
        if i < n - 1:
            H = _activation(activation, H)
    return H


def init_params(layers, key):
    """PyTorch-style uniform(+-1/sqrt(fan_in)) init; weights are (out, in)."""
    weights, biases = [], []
    for i in range(len(layers) - 1):
        fan_in, fan_out = layers[i], layers[i + 1]
        key, kw, kb = jax.random.split(key, 3)
        bound = 1.0 / jnp.sqrt(fan_in)
        weights.append(jax.random.uniform(kw, (fan_out, fan_in), jnp.float32, -bound, bound))
        biases.append(jax.random.uniform(kb, (fan_out,), jnp.float32, -bound, bound))
    return weights, biases


if __name__ == "__main__":
    key = jax.random.PRNGKey(0)

    # Small Navier-Stokes-style PINN: inputs (x, y, t) -> outputs (psi, p)
    layers = [3, 32, 32, 2]
    N = 256
    activation = "tanh"

    key, kx = jax.random.split(key)
    x = jax.random.uniform(kx, (N, layers[0]), jnp.float32, -1.0, 8.0)
    lb = jnp.array([-1.0, -1.0, 0.0], dtype=jnp.float32)
    ub = jnp.array([8.0, 1.0, 20.0], dtype=jnp.float32)
    weights, biases = init_params(layers, key)

    # jit so the transpose/pad of x and the layer-0 folding fuse with the call.
    fwd = jax.jit(neural_net_forward,
                  static_argnames=("activation", "tm", "num_cores"))
    out = fwd(x, lb, ub, weights, biases, activation=activation)
    out = jax.block_until_ready(out)

    ref = neural_net_reference(x, lb, ub, weights, biases, activation=activation)
    assert out.shape == (N, layers[-1])
    assert jnp.allclose(out, ref, atol=2e-5, rtol=2e-5), "mismatch vs reference"

    print("KERNEL_OK")
</pallas_src>

<mosaic_0001>
module attributes {stable_mosaic.version = 11 : i64} {
  func.func @kernel(%arg0: i32, %arg1: memref<3x256xf32, #tpu.memory_space<vmem>>, %arg2: memref<32x3xf32, #tpu.memory_space<vmem>>, %arg3: memref<32x1xf32, #tpu.memory_space<vmem>>, %arg4: memref<2x32x32xf32, #tpu.memory_space<vmem>>, %arg5: memref<2x32x1xf32, #tpu.memory_space<vmem>>, %arg6: memref<2x256xf32, #tpu.memory_space<vmem>>) attributes {dimension_semantics = [#tpu.dimension_semantics<parallel>], iteration_bounds = array<i64: 1>, scalar_prefetch = 0 : i64, scratch_operands = 0 : i64, tpu.core_type = #tpu.core_type<tc>, window_params = [{transform_indices = @transform_0, window_bounds = array<i64: 3, 256>}, {pipeline_mode = #tpu.pipeline_mode<synchronous>, transform_indices = @transform_1, window_bounds = array<i64: 32, 3>}, {pipeline_mode = #tpu.pipeline_mode<synchronous>, transform_indices = @transform_2, window_bounds = array<i64: 32, 1>}, {pipeline_mode = #tpu.pipeline_mode<synchronous>, transform_indices = @transform_3, window_bounds = array<i64: 2, 32, 32>}, {pipeline_mode = #tpu.pipeline_mode<synchronous>, transform_indices = @transform_4, window_bounds = array<i64: 2, 32, 1>}, {transform_indices = @transform_5, window_bounds = array<i64: 2, 256>}]} {
    %c0 = arith.constant 0 : index
    %c0_0 = arith.constant 0 : index
    %0 = vector.load %arg1[%c0, %c0_0] : memref<3x256xf32, #tpu.memory_space<vmem>>, vector<3x256xf32>
    %c0_1 = arith.constant 0 : index
    %c0_2 = arith.constant 0 : index
    %1 = vector.load %arg2[%c0_1, %c0_2] : memref<32x3xf32, #tpu.memory_space<vmem>>, vector<32x3xf32>
    %c0_3 = arith.constant 0 : index
    %c0_4 = arith.constant 0 : index
    %2 = vector.load %arg3[%c0_3, %c0_4] : memref<32x1xf32, #tpu.memory_space<vmem>>, vector<32x1xf32>
    %3 = vector.extract_strided_slice %1 {offsets = [0, 0], sizes = [32, 1], strides = [1, 1]} : vector<32x3xf32> to vector<32x1xf32>
    %4 = vector.extract_strided_slice %0 {offsets = [0, 0], sizes = [1, 256], strides = [1, 1]} : vector<3x256xf32> to vector<1x256xf32>
    %5 = vector.broadcast %3 : vector<32x1xf32> to vector<32x256xf32>
    %6 = vector.broadcast %4 : vector<1x256xf32> to vector<32x256xf32>
    %7 = arith.mulf %5, %6 : vector<32x256xf32>
    %8 = vector.broadcast %2 : vector<32x1xf32> to vector<32x256xf32>
    %9 = arith.addf %7, %8 : vector<32x256xf32>
    %10 = vector.extract_strided_slice %1 {offsets = [0, 1], sizes = [32, 1], strides = [1, 1]} : vector<32x3xf32> to vector<32x1xf32>
    %11 = vector.extract_strided_slice %0 {offsets = [1, 0], sizes = [1, 256], strides = [1, 1]} : vector<3x256xf32> to vector<1x256xf32>
    %12 = vector.broadcast %10 : vector<32x1xf32> to vector<32x256xf32>
    %13 = vector.broadcast %11 : vector<1x256xf32> to vector<32x256xf32>
    %14 = arith.mulf %12, %13 : vector<32x256xf32>
    %15 = arith.addf %9, %14 : vector<32x256xf32>
    %16 = vector.extract_strided_slice %1 {offsets = [0, 2], sizes = [32, 1], strides = [1, 1]} : vector<32x3xf32> to vector<32x1xf32>
    %17 = vector.extract_strided_slice %0 {offsets = [2, 0], sizes = [1, 256], strides = [1, 1]} : vector<3x256xf32> to vector<1x256xf32>
    %18 = vector.broadcast %16 : vector<32x1xf32> to vector<32x256xf32>
    %19 = vector.broadcast %17 : vector<1x256xf32> to vector<32x256xf32>
    %20 = arith.mulf %18, %19 : vector<32x256xf32>
    %21 = arith.addf %15, %20 : vector<32x256xf32>
    %22 = math.tanh %21 : vector<32x256xf32>
    %c0_5 = arith.constant 0 : index
    %c0_6 = arith.constant 0 : index
    %c0_7 = arith.constant 0 : index
    %23 = vector.load %arg4[%c0_5, %c0_6, %c0_7] : memref<2x32x32xf32, #tpu.memory_space<vmem>>, vector<1x32x32xf32>
    %24 = vector.shape_cast %23 : vector<1x32x32xf32> to vector<32x32xf32>
    %cst = arith.constant dense<0.000000e+00> : vector<32x256xf32>
    %25 = tpu.matmul %24, %22, %cst {dimension_numbers = #tpu.dot_dimension_numbers<[1], [0], [0], [1], [0, 0, 1, 1], [], []>} : vector<32x32xf32>, vector<32x256xf32>, vector<32x256xf32> -> vector<32x256xf32>
    %c0_8 = arith.constant 0 : index
    %c0_9 = arith.constant 0 : index
    %c0_10 = arith.constant 0 : index
    %26 = vector.load %arg5[%c0_8, %c0_9, %c0_10] : memref<2x32x1xf32, #tpu.memory_space<vmem>>, vector<1x32x1xf32>
    %27 = vector.shape_cast %26 : vector<1x32x1xf32> to vector<32x1xf32>
    %28 = vector.broadcast %27 : vector<32x1xf32> to vector<32x256xf32>
    %29 = arith.addf %25, %28 : vector<32x256xf32>
    %30 = math.tanh %29 : vector<32x256xf32>
    %c1 = arith.constant 1 : index
    %c0_11 = arith.constant 0 : index
    %c0_12 = arith.constant 0 : index
    %31 = vector.load %arg4[%c1, %c0_11, %c0_12] : memref<2x32x32xf32, #tpu.memory_space<vmem>>, vector<1x32x32xf32>
    %32 = vector.shape_cast %31 : vector<1x32x32xf32> to vector<32x32xf32>
    %cst_13 = arith.constant dense<0.000000e+00> : vector<32x256xf32>
    %33 = tpu.matmul %32, %30, %cst_13 {dimension_numbers = #tpu.dot_dimension_numbers<[1], [0], [0], [1], [0, 0, 1, 1], [], []>} : vector<32x32xf32>, vector<32x256xf32>, vector<32x256xf32> -> vector<32x256xf32>
    %c1_14 = arith.constant 1 : index
    %c0_15 = arith.constant 0 : index
    %c0_16 = arith.constant 0 : index
    %34 = vector.load %arg5[%c1_14, %c0_15, %c0_16] : memref<2x32x1xf32, #tpu.memory_space<vmem>>, vector<1x32x1xf32>
    %35 = vector.shape_cast %34 : vector<1x32x1xf32> to vector<32x1xf32>
    %36 = vector.broadcast %35 : vector<32x1xf32> to vector<32x256xf32>
    %37 = arith.addf %33, %36 : vector<32x256xf32>
    %38 = vector.extract_strided_slice %37 {offsets = [0, 0], sizes = [2, 256], strides = [1, 1]} : vector<32x256xf32> to vector<2x256xf32>
    %c0_17 = arith.constant 0 : index
    %c0_18 = arith.constant 0 : index
    %39 = vector.load %arg6[%c0_17, %c0_18] : memref<2x256xf32, #tpu.memory_space<vmem>>, vector<2x256xf32>
    tpu.vector_store %arg6[%c0_17, %c0_18], %38 {strides = array<i32>} : memref<2x256xf32, #tpu.memory_space<vmem>>, vector<2x256xf32>,
    return
  }
  func.func @transform_0(%arg0: i32) -> (i32, i32) {
    %c0_i32 = arith.constant 0 : i32
    %c0_i32_0 = arith.constant 0 : i32
    return %c0_i32, %arg0 : i32, i32
  }
  func.func @transform_1(%arg0: i32) -> (i32, i32) {
    %c0_i32 = arith.constant 0 : i32
    %c0_i32_0 = arith.constant 0 : i32
    %c0_i32_1 = arith.constant 0 : i32
    return %c0_i32, %c0_i32_0 : i32, i32
  }
  func.func @transform_2(%arg0: i32) -> (i32, i32) {
    %c0_i32 = arith.constant 0 : i32
    %c0_i32_0 = arith.constant 0 : i32
    %c0_i32_1 = arith.constant 0 : i32
    return %c0_i32, %c0_i32_0 : i32, i32
  }
  func.func @transform_3(%arg0: i32) -> (i32, i32, i32) {
    %c0_i32 = arith.constant 0 : i32
    %c0_i32_0 = arith.constant 0 : i32
    %c0_i32_1 = arith.constant 0 : i32
    %c0_i32_2 = arith.constant 0 : i32
    return %c0_i32, %c0_i32_0, %c0_i32_1 : i32, i32, i32
  }
  func.func @transform_4(%arg0: i32) -> (i32, i32, i32) {
    %c0_i32 = arith.constant 0 : i32
    %c0_i32_0 = arith.constant 0 : i32
    %c0_i32_1 = arith.constant 0 : i32
    %c0_i32_2 = arith.constant 0 : i32
    return %c0_i32, %c0_i32_0, %c0_i32_1 : i32, i32, i32
  }
  func.func @transform_5(%arg0: i32) -> (i32, i32) {
    %c0_i32 = arith.constant 0 : i32
    %c0_i32_0 = arith.constant 0 : i32
    return %c0_i32, %arg0 : i32, i32
  }
}

</mosaic_0001>

<bundles_post_ra>
// kernel: neural_net_forward.1
= control target key start
LH: loop header
LB: loop body
LE: loop exit
PB: predicated region body
PF: predicated region fallthrough
CT: control target
= control target key end

     0   :  { %v498_v2 = vmov 0   ;;  %s645_s0 = inlined_call_operand.vmem [shape: f32[3,256], index: 0, kind: input, shape index: {}]   ;;  %s646_s1 = inlined_call_operand.vmem [shape: f32[32,3], index: 1, kind: input, shape index: {}]   ;;  %s647_s2 = inlined_call_operand.vmem [shape: f32[32,1], index: 2, kind: input, shape index: {}]   ;;  %s648_s3 = inlined_call_operand.vmem [shape: f32[2,32,32], index: 3, kind: input, shape index: {}]   ;;  %s649_s4 = inlined_call_operand.vmem [shape: f32[2,32,1], index: 4, kind: input, shape index: {}]   ;;  %s650_s5 = inlined_call_operand.hbm [shape: f32[2,256], index: 5, kind: output, shape index: {}]  }
   0x1   :  { %v29_v0 = vld [vmem:[%s647_s2 + $0x18] sm:$0xff]  ;;  %427 = vset.pattern.permute.xlu1 %v498_v2  ;;  %426 = vset.pattern.permute.xlu0 %v498_v2  ;;  %v23_v3 = vld [vmem:[%s646_s1 + $0x8] sm:$0xff] }
   0x2   :  { %v25_v1 = vld [vmem:[%s646_s1 + $0x18] sm:$0xff]  ;;  %82 = vperm.xlu1 %427, %v29_v0  }
   0x3   :  { %47 = vperm.xlu0 %426, %v25_v1  }
   0x4   :  { %10 = vsyncpa [#allocation3], 0  ;;  %429 = vset.pattern.permute.xlu2 %v498_v2  ;;  %v24_v4 = vld [vmem:[%s646_s1 + $0x10] sm:$0xff]  ;;  %v499_v6 = vmov 1   ;;  %v22_v7 = vld [vmem:[%s646_s1] sm:$0xff]  ;;  %v500_v8 = vmov 2  }
   0x5   :  { %37 = vperm.xlu2 %429, %v23_v3   ;;  %v28_v5 = vld [vmem:[%s647_s2 + $0x10] sm:$0xff]  ;;  %v27_v9 = vld [vmem:[%s647_s2 + $0x8] sm:$0xff]  ;;  %v26_v10 = vld [vmem:[%s647_s2] sm:$0xff]  ;;  %vm205_vm0 = vcmask 261120   ;;  %s501_s8 = smov [#allocation2]   ;;  %s389_s2 = sshll.u32 %s650_s5, 4  ;;  %s390_s2 = int_to_ptr.hbm [resolvable:$true] %s389_s2 }
   0x6   :  { %v21_v14 = vld [vmem:[%s645_s0] sm:$0x77]  ;;  %v183_v58 = vld [vmem:[%s649_s4 + $0x10] sm:$0xff]  ;;  %s387_s1 = sshll.u32 %s501_s8, 4  ;;  %vm378_vm1 = vcmask 1041408   ;;  %s388_s1 = int_to_ptr.vmem [resolvable:$true] %s387_s1 }
   0x7   :  { %v51_v16 = vperm.slane %v21_v14, 0  ;;  %v52_v17 = vperm.slane %v21_v14, 4  ;;  %v109_v18 = vperm.slane %v21_v14, 1  ;;  %v110_v19 = vperm.slane %v21_v14, 5 }
   0x8   :  { %v147_v26 = vperm.slane %v21_v14, 2  ;;  %v148_v27 = vperm.slane %v21_v14, 6 }
   0x9   :  { %v55_v21 = vperm.slane %v51_v16, 0  ;;  %v56_v22 = vperm.slane %v52_v17, 0  ;;  %v561_v24 = vperm.slane %v109_v18, 1  ;;  %v563_v25 = vperm.slane %v110_v19, 1 }
   0xa   :  { %428 = vset.pattern.permute.xlu1 %v499_v6  ;;  %v567_v33 = vperm.slane %v147_v26, 2  ;;  %v569_v34 = vperm.slane %v148_v27, 2 }
   0xb   :  { %42 = vperm.xlu0 %426, %v24_v4   ;;  %106 = vperm.xlu1 %428, %v25_v1  }
   0xd   :  { %77 = vperm.xlu2 %429, %v28_v5  }
  0x13   :  { %430 = vset.pattern.permute.xlu0 %v499_v6  ;;  %431 = vset.pattern.permute.xlu1 %v500_v8 }
  0x14   :  { %102 = vperm.xlu0 %430, %v24_v4   ;;  %144 = vperm.xlu1 %431, %v25_v1   ;;  %v181_v1 = vld [vmem:[%s649_s4] sm:$0xff] }
  0x15   :  { %32 = vperm.xlu2 %429, %v22_v7  }
  0x1c   :  { %434 = vset.pattern.permute.xlu0 %v500_v8  ;;  %432 = vset.pattern.permute.xlu1 %v498_v2 }
  0x1d   :  { %140 = vperm.xlu0 %434, %v24_v4   ;;  %72 = vperm.xlu1 %432, %v27_v9  }
  0x1e   :  { %433 = vset.pattern.permute.xlu2 %v499_v6 }
  0x1f   :  { %98 = vperm.xlu2 %433, %v23_v3  }
  0x25   :  { %437 = vset.pattern.permute.xlu0 %v498_v2  ;;  %67 = vperm.xlu1 %432, %v26_v10  }
  0x27   :  { %94 = vperm.xlu2 %433, %v22_v7  }
  0x2d   :  { %435 = vset.pattern.permute.xlu1 %v500_v8 }
  0x2e   :  { %136 = vperm.xlu1 %435, %v23_v3  }
  0x2f   :  { %436 = vset.pattern.permute.xlu2 %v500_v8 }
  0x30   :  { %132 = vperm.xlu2 %436, %v22_v7  }
  0x36   :  { %438 = vset.pattern.permute.xlu1 %v498_v2 }
  0x37   :  { %197 = vperm.xlu1 %438, %v183_v58  }
  0x38   :  { %439 = vset.pattern.permute.xlu2 %v498_v2 }
  0x3f   :  { %187 = vperm.xlu1 %438, %v181_v1  }
  0x5f   :  { %v556_v11 = vpop.permute.xlu2 %37 }
  0x60   :  { %v59_v6 = vmul.f32 %v55_v21, %v556_v11  ;;  %v60_v7 = vmul.f32 %v56_v22, %v556_v11 }
  0x67   :  { %v78_v15 = vpop.permute.xlu2 %77 }
  0x6f   :  { %v33_v28 = vpop.permute.xlu2 %32 }
  0x70   :  { %v57_v3 = vmul.f32 %v55_v21, %v33_v28  ;;  %v58_v5 = vmul.f32 %v56_v22, %v33_v28 }
  0x74   :  { %v83_v12 = vpop.permute.xlu1 %82 }
  0x75   :  { %v48_v13 = vpop.permute.xlu0 %47 }
  0x76   :  { %v63_v29 = vmul.f32 %v55_v21, %v48_v13  ;;  %v64_v30 = vmul.f32 %v56_v22, %v48_v13 }
  0x78   :  { %v91_v35 = vadd.f32 %v83_v12, %v63_v29  ;;  %v92_v36 = vadd.f32 %v83_v12, %v64_v30 }
  0x79   :  { %v99_v43 = vpop.permute.xlu2 %98 }
  0x7a   :  { %v117_v9 = vmul.f32 %v561_v24, %v99_v43  ;;  %v118_v13 = vmul.f32 %v563_v25, %v99_v43 }
  0x7d   :  { %v43_v20 = vpop.permute.xlu0 %42  ;;  %v107_v23 = vpop.permute.xlu1 %106 }
  0x7e   :  { %v121_v31 = vmul.f32 %v561_v24, %v107_v23  ;;  %v122_v32 = vmul.f32 %v563_v25, %v107_v23  ;;  %v61_v44 = vmul.f32 %v55_v21, %v43_v20  ;;  %v62_v45 = vmul.f32 %v56_v22, %v43_v20 }
  0x80   :  { %v129_v41 = vadd.f32 %v121_v31, %v91_v35  ;;  %v130_v42 = vadd.f32 %v122_v32, %v92_v36  ;;  %v89_v50 = vadd.f32 %v78_v15, %v61_v44  ;;  %v90_v51 = vadd.f32 %v78_v15, %v62_v45 }
  0x81   :  { %v95_v63 = vpop.permute.xlu2 %94 }
  0x82   :  { %v115_v16 = vmul.f32 %v561_v24, %v95_v63  ;;  %v116_v17 = vmul.f32 %v563_v25, %v95_v63 }
  0x86   :  { %v103_v37 = vpop.permute.xlu0 %102  ;;  %v145_v38 = vpop.permute.xlu1 %144 }
  0x87   :  { %v159_v39 = vmul.f32 %v567_v33, %v145_v38  ;;  %v160_v40 = vmul.f32 %v569_v34, %v145_v38  ;;  %v119_v48 = vmul.f32 %v561_v24, %v103_v37  ;;  %v120_v49 = vmul.f32 %v563_v25, %v103_v37  ;;  %v184_v24 = vld [vmem:[%s649_s4 + $0x18] sm:$0xff]  ;;  %v182_v25 = vld [vmem:[%s649_s4 + $0x8] sm:$0xff]  ;;  %v410_v37 = vld [vmem:[%s649_s4 + $0x20] sm:$0xff] }
  0x88   :  { %202 = vperm.xlu0 %437, %v184_v24   ;;  %192 = vperm.xlu2 %439, %v182_v25   ;;  %v178_v38 = vld [vmem:[%s648_s3 + $0x8] sm:$0xff] }
  0x89   :  { %v167_v46 = vadd.f32 %v159_v39, %v129_v41  ;;  %v168_v47 = vadd.f32 %v160_v40, %v130_v42  ;;  %v127_v53 = vadd.f32 %v119_v48, %v89_v50  ;;  %v128_v54 = vadd.f32 %v120_v49, %v90_v51  ;;  %v179_v39 = vld [vmem:[%s648_s3 + $0x10] sm:$0xff]  ;;  %v180_v40 = vld [vmem:[%s648_s3 + $0x18] sm:$0xff] }
  0x8a   :  { %v133_v12 = vpop.permute.xlu2 %132 }
  0x8b   :  { %440 = vtanh.f32 %v167_v46  ;;  %v153_v19 = vmul.f32 %v567_v33, %v133_v12  ;;  %v154_v11 = vmul.f32 %v569_v34, %v133_v12 }
  0x8c   :  { %442 = vtanh.f32 %v168_v47 }
  0x8f   :  { %v141_v52 = vpop.permute.xlu0 %140  ;;  %v73_v57 = vpop.permute.xlu1 %72 }
  0x90   :  { %v157_v55 = vmul.f32 %v567_v33, %v141_v52  ;;  %v158_v56 = vmul.f32 %v569_v34, %v141_v52  ;;  %v87_v14 = vadd.f32 %v73_v57, %v59_v6  ;;  %v88_v15 = vadd.f32 %v73_v57, %v60_v7  ;;  %296 = vperm.xlu2 %439, %v410_v37   ;;  %v407_v6 = vld [vmem:[%s648_s3 + $0x28] sm:$0xff]  ;;  %v408_v7 = vld [vmem:[%s648_s3 + $0x30] sm:$0xff] }
  0x91   :  { %v441_v59 = vpop.eup %440 }
  0x92   :  { %v165_v60 = vadd.f32 %v157_v55, %v127_v53  ;;  %v166_v61 = vadd.f32 %v158_v56, %v128_v54  ;;  %v443_v62 = vpop.eup %442  ;;  %230 = vmatpush.msra.mxu0 %v441_v59  ;;  %v125_v22 = vadd.f32 %v117_v9, %v87_v14  ;;  %v126_v23 = vadd.f32 %v118_v13, %v88_v15 }
  0x93   :  { %259 = vmatpush.msra.mxu1 %v443_v62 }
  0x94   :  { %444 = vtanh.f32 %v165_v60 }
  0x95   :  { %446 = vtanh.f32 %v166_v61 }
  0x97   :  { %v68_v0 = vpop.permute.xlu1 %67 }
  0x98   :  { %v85_v8 = vadd.f32 %v68_v0, %v57_v3  ;;  %v86_v10 = vadd.f32 %v68_v0, %v58_v5  ;;  %v406_v3 = vld [vmem:[%s648_s3 + $0x20] sm:$0xff] }
  0x9a   :  { %v445_v2 = vpop.eup %444  ;;  %v123_v18 = vadd.f32 %v115_v16, %v85_v8  ;;  %v124_v20 = vadd.f32 %v116_v17, %v86_v10  ;;  %v409_v8 = vld [vmem:[%s648_s3 + $0x38] sm:$0xff] }
  0x9b   :  { %v447_v4 = vpop.eup %446  ;;  %231 = vmatpush.msra.mxu0 %v445_v2 }
  0x9c   :  { %260 = vmatpush.msra.mxu1 %v447_v4  ;;  %v161_v28 = vadd.f32 %v153_v19, %v123_v18  ;;  %v162_v31 = vadd.f32 %v154_v11, %v124_v20 }
  0xa0   :  { %v137_v21 = vpop.permute.xlu1 %136 }
  0xa1   :  { %v155_v26 = vmul.f32 %v567_v33, %v137_v21  ;;  %v156_v27 = vmul.f32 %v569_v34, %v137_v21  ;;  %v177_v34 = vld [vmem:[%s648_s3] sm:$0xff] }
  0xa3   :  { %v163_v29 = vadd.f32 %v155_v26, %v125_v22  ;;  %v164_v30 = vadd.f32 %v156_v27, %v126_v23 }
  0xa5   :  { %448 = vtanh.f32 %v163_v29 }
  0xa6   :  { %450 = vtanh.f32 %v164_v30 }
  0xa7   :  { %452 = vtanh.f32 %v161_v28 }
  0xa8   :  { %454 = vtanh.f32 %v162_v31 }
  0xa9   :  { %v198_v45 = vpop.permute.xlu1 %197 }
  0xab   :  { %v449_v32 = vpop.eup %448 }
  0xac   :  { %v451_v33 = vpop.eup %450  ;;  %232 = vmatpush.msra.mxu0 %v449_v32 }
  0xad   :  { %v453_v35 = vpop.eup %452  ;;  %261 = vmatpush.msra.mxu1 %v451_v33 }
  0xae   :  { %v455_v36 = vpop.eup %454  ;;  %233 = vmatpush.msra.mxu0 %v453_v35 }
  0xaf   :  { %262 = vmatpush.msra.mxu1 %v455_v36  ;;  %398 = vmatmul.msk.f32.vlgmr.msra.gmra.mxu0 %vm205_vm0, %v177_v34 }
  0xb0   :  { %402 = vmatmul.msk.f32.vlgmr.msra.gmra.mxu1 %vm205_vm0, %v177_v34 }
  0xb1   :  { %v188_v54 = vpop.permute.xlu1 %187 }
  0xb7   :  { %399 = vmatmul.msk.f32.gmra.mxu0 %vm205_vm0, %v178_v38 }
  0xb8   :  { %403 = vmatmul.msk.f32.gmra.mxu1 %vm205_vm0, %v178_v38 }
  0xbf   :  { %400 = vmatmul.msk.f32.gmra.mxu0 %vm205_vm0, %v179_v39 }
  0xc0   :  { %404 = vmatmul.msk.f32.gmra.mxu1 %vm205_vm0, %v179_v39 }
  0xc7   :  { %401 = vmatmul.msk.f32.gmra.mxu0 %vm205_vm0, %v180_v40 }
  0xc8   :  { %405 = vmatmul.msk.f32.gmra.mxu1 %vm205_vm0, %v180_v40 }
  0xe2   :  { %v193_v49 = vpop.permute.xlu2 %192 }
  0xea   :  { %v297_v10 = vpop.permute.xlu2 %296 }
  0xfa   :  { %v203_v48 = vpop.permute.xlu0 %202 }
 0x12c   :  { %v235_v41 = vpop.f32.mrf.mxu0 }
 0x12d   :  { %v264_v42 = vpop.f32.mrf.mxu1  ;;  %v236_v59 = vadd.f32 %v235_v41, %v188_v54 }
 0x12e   :  { %v265_v60 = vadd.f32 %v264_v42, %v188_v54 }
 0x134   :  { %v238_v43 = vpop.f32.mrf.mxu0 }
 0x135   :  { %v267_v44 = vpop.f32.mrf.mxu1  ;;  %v239_v57 = vadd.f32 %v238_v43, %v193_v49 }
 0x136   :  { %v268_v58 = vadd.f32 %v267_v44, %v193_v49 }
 0x13c   :  { %v241_v46 = vpop.f32.mrf.mxu0 }
 0x13d   :  { %v270_v47 = vpop.f32.mrf.mxu1  ;;  %v242_v51 = vadd.f32 %v241_v46, %v198_v45 }
 0x13e   :  { %v271_v55 = vadd.f32 %v270_v47, %v198_v45 }
 0x144   :  { %v244_v50 = vpop.f32.mrf.mxu0 }
 0x145   :  { %v245_v52 = vadd.f32 %v244_v50, %v203_v48  ;;  %v273_v53 = vpop.f32.mrf.mxu1 }
 0x146   :  { %v274_v56 = vadd.f32 %v273_v53, %v203_v48 }
 0x147   :  { %456 = vtanh.f32 %v245_v52 }
 0x148   :  { %458 = vtanh.f32 %v274_v56 }
 0x149   :  { %460 = vtanh.f32 %v242_v51 }
 0x14a   :  { %462 = vtanh.f32 %v271_v55 }
 0x14b   :  { %464 = vtanh.f32 %v239_v57 }
 0x14c   :  { %466 = vtanh.f32 %v268_v58 }
 0x14d   :  { %v457_v61 = vpop.eup %456  ;;  %468 = vtanh.f32 %v236_v59 }
 0x14e   :  { %v459_v62 = vpop.eup %458  ;;  %470 = vtanh.f32 %v265_v60  ;;  %335 = vmatpush.msra.mxu2 %v457_v61 }
 0x14f   :  { %v461_v63 = vpop.eup %460  ;;  %361 = vmatpush.msra.mxu3 %v459_v62 }
 0x150   :  { %v463_v0 = vpop.eup %462  ;;  %336 = vmatpush.msra.mxu2 %v461_v63 }
 0x151   :  { %v465_v1 = vpop.eup %464  ;;  %362 = vmatpush.msra.mxu3 %v463_v0 }
 0x152   :  { %v467_v2 = vpop.eup %466  ;;  %337 = vmatpush.msra.mxu2 %v465_v1 }
 0x153   :  { %v469_v4 = vpop.eup %468  ;;  %363 = vmatpush.msra.mxu3 %v467_v2 }
 0x154   :  { %v471_v5 = vpop.eup %470  ;;  %338 = vmatpush.msra.mxu2 %v469_v4 }
 0x155   :  { %364 = vmatpush.msra.mxu3 %v471_v5  ;;  %414 = vmatmul.msk.f32.vlgmr.msra.gmra.mxu2 %vm205_vm0, %v406_v3 }
 0x156   :  { %418 = vmatmul.msk.f32.vlgmr.msra.gmra.mxu3 %vm205_vm0, %v406_v3 }
 0x15d   :  { %415 = vmatmul.msk.f32.gmra.mxu2 %vm205_vm0, %v407_v6 }
 0x15e   :  { %419 = vmatmul.msk.f32.gmra.mxu3 %vm205_vm0, %v407_v6 }
 0x165   :  { %416 = vmatmul.msk.f32.gmra.mxu2 %vm205_vm0, %v408_v7 }
 0x166   :  { %420 = vmatmul.msk.f32.gmra.mxu3 %vm205_vm0, %v408_v7 }
 0x16d   :  { %417 = vmatmul.msk.f32.gmra.mxu2 %vm205_vm0, %v409_v8 }
 0x16e   :  { %421 = vmatmul.msk.f32.gmra.mxu3 %vm205_vm0, %v409_v8 }
 0x1d8   :  { %v340_v9 = vpop.f32.mrf.mxu2 }
 0x1d9   :  { %v366_v12 = vpop.f32.mrf.mxu3  ;;  %v341_v14 = vadd.f32 %v340_v9, %v297_v10 }
 0x1da   :  { %v367_v13 = vadd.f32 %v366_v12, %v297_v10 }
 0x1dc   :  { %v377_v15 = vrot.slane %v367_v13, 6 }
 0x1de   :  { %v379_v16 = vsel %vm378_vm1, %v341_v14, %v377_v15 }
 0x1df   :  { %381 = vst [vmem:[#allocation2] sm:$0xf] %v379_v16 }
 0x1e0   :  { %v343_v17 = vpop.f32.mrf.mxu2  ;;  %392 = dma.vmem_to_hbm [thread:$0]  %s388_s1, 64, %s390_s2, [#allocation3]  }
 0x1e1   :  { %v369_v18 = vpop.f32.mrf.mxu3 }
 0x1e8   :  { %v345_v19 = vpop.f32.mrf.mxu2 }
 0x1e9   :  { %v371_v20 = vpop.f32.mrf.mxu3 }
 0x1f0   :  { %v347_v11 = vpop.f32.mrf.mxu2 }
 0x1f1   :  { %v373_v21 = vpop.f32.mrf.mxu3 }
 0x1f2   :  { %496 = dma.done.wait [#allocation3], 64  }
 0x1f3   :  { %497 = vsyncadd [#allocation3], 4294967232 }
 0x1f4   :  { %397 = vsyncpa [#allocation3], 1 }

</bundles_post_ra>
